<compile_context>
chip_gen: v7x
topology: tpu7x:2x2x1
jax: 0.10.0
libtpu: 0.0.40
codegen_flags: <defaults>
</compile_context>

<pallas_src>
import functools

import jax
import jax.numpy as jnp
from jax.experimental import pallas as pl
from jax.experimental.pallas import tpu as pltpu


def _round_up(x, m):
    return (x + m - 1) // m * m


# ----------------------------------------------------------------------------
# shared in-kernel helpers
# ----------------------------------------------------------------------------
def _layernorm(x, gamma, beta, eps=1e-5):
    # LayerNorm(x.float()).type(x.dtype); keep all VPU/EUP math in f32.
    x = x.astype(jnp.float32)
    mu = jnp.mean(x, axis=-1, keepdims=True)
    var = jnp.mean((x - mu) ** 2, axis=-1, keepdims=True)
    return (x - mu) * jax.lax.rsqrt(var + eps) * gamma + beta


# ----------------------------------------------------------------------------
# kernel 1: patch embedding  (Conv2d(k=stride=P, bias=False)  ==  matmul)
# ----------------------------------------------------------------------------
def _patch_embed_kernel(p_ref, w_ref, o_ref):
    o_ref[...] = jnp.dot(p_ref[...], w_ref[...],
                         preferred_element_type=jnp.float32)


def patch_embed(patches, w_flat, *, tile_m=256):
    # patches: [B*N, Cin*P*P] bf16, w_flat: [Cin*P*P, width] bf16 (MXU operands)
    m, k = patches.shape
    _, w = w_flat.shape
    tile_m = tile_m if m >= tile_m else _round_up(m, 8)
    m_pad = _round_up(m, tile_m)
    if m_pad != m:
        patches = jnp.pad(patches, ((0, m_pad - m), (0, 0)))
    out = pl.pallas_call(
        _patch_embed_kernel,
        out_shape=jax.ShapeDtypeStruct((m_pad, w), jnp.float32),
        grid=(m_pad // tile_m,),
        in_specs=[pl.BlockSpec((tile_m, k), lambda i: (i, 0)),
                  pl.BlockSpec((k, w), lambda i: (0, 0))],
        out_specs=pl.BlockSpec((tile_m, w), lambda i: (i, 0)),
        compiler_params=pltpu.CompilerParams(
            dimension_semantics=("parallel",)),
    )(patches, w_flat)
    return out[:m]


# ----------------------------------------------------------------------------
# kernel 2: fused (+pos_emb, ln_pre) + ALL residual attention blocks
#   grid = (batch, layers); residual stream lives in the layer-invariant
#   output block (VMEM-resident across the 'arbitrary' layer axis).
# ----------------------------------------------------------------------------
def _vit_blocks_kernel(x_ref, pos_ref, lnpre_g_ref, lnpre_b_ref,
                       ln1g_ref, ln1b_ref, wqkv_ref, bqkv_ref, wo_ref, bo_ref,
                       ln2g_ref, ln2b_ref, wfc_ref, bfc_ref, wpr_ref, bpr_ref,
                       o_ref, *, heads, width, seq_len, seq_pad):
    dh = width // heads
    scale = dh ** -0.5
    layer = pl.program_id(1)

    # layer 0: initialize the residual stream = ln_pre(x + positional_embedding)
    @pl.when(layer == 0)
    def _():
        x0 = x_ref[0].astype(jnp.float32) + pos_ref[...]
        o_ref[0] = _layernorm(x0, lnpre_g_ref[...], lnpre_b_ref[...])

    x = o_ref[0]                                                    # [S, W] f32

    # ---- multi-head self-attention (bf16 MXU operands, f32 accumulation) ----
    h = _layernorm(x, ln1g_ref[0], ln1b_ref[0])
    qkv = jnp.dot(h.astype(jnp.bfloat16), wqkv_ref[0],
                  preferred_element_type=jnp.float32) + bqkv_ref[0]  # [S, 3W]
    q = qkv[:, :width] * scale
    k = qkv[:, width:2 * width]
    v = qkv[:, 2 * width:]

    # [heads, S, dh] views (static head slices, stacked on the leading axis)
    qh = jnp.stack([q[:, hd * dh:(hd + 1) * dh] for hd in range(heads)],
                   axis=0).astype(jnp.bfloat16)
    kh = jnp.stack([k[:, hd * dh:(hd + 1) * dh] for hd in range(heads)],
                   axis=0).astype(jnp.bfloat16)
    vh = jnp.stack([v[:, hd * dh:(hd + 1) * dh] for hd in range(heads)],
                   axis=0).astype(jnp.bfloat16)

    # batched scores for all heads at once: [H, S, S]
    sc = jnp.einsum('hqd,hkd->hqk', qh, kh,
                    preferred_element_type=jnp.float32)
    # mask padded key columns so sequence padding never affects real tokens
    key_ids = jax.lax.broadcasted_iota(jnp.int32, (1, 1, seq_pad), 2)
    sc = jnp.where(key_ids < seq_len, sc, -1e30)

    sc = sc - jnp.max(sc, axis=-1, keepdims=True)
    p = jnp.exp(sc)
    inv = pl.reciprocal(jnp.sum(p, axis=-1, keepdims=True), approx=True)
    p = p * inv

    # batched PV for all heads: [H, S, dh]
    oh = jnp.einsum('hqk,hkd->hqd', p.astype(jnp.bfloat16), vh,
                    preferred_element_type=jnp.float32)
    # concat heads -> [S, W] and ONE output-projection matmul with K = width
    oh = jnp.concatenate([oh[hd] for hd in range(heads)], axis=-1)
    attn = jnp.dot(oh.astype(jnp.bfloat16), wo_ref[0],
                   preferred_element_type=jnp.float32) + bo_ref[0]
    x = x + attn

    # ---- MLP (c_fc -> QuickGELU -> c_proj) ----
    h2 = _layernorm(x, ln2g_ref[0], ln2b_ref[0])
    h2 = jnp.dot(h2.astype(jnp.bfloat16), wfc_ref[0],
                 preferred_element_type=jnp.float32) + bfc_ref[0]
    h2 = h2 * jax.nn.sigmoid(1.702 * h2)                            # QuickGELU, f32
    h2 = jnp.dot(h2.astype(jnp.bfloat16), wpr_ref[0],
                 preferred_element_type=jnp.float32) + bpr_ref[0]

    o_ref[0] = x + h2


def transformer_blocks(seq, pos, lnpre, stacked, *, heads, seq_len):
    b, s_pad, w = seq.shape
    layers = stacked[0].shape[0]
    kernel = functools.partial(_vit_blocks_kernel, heads=heads, width=w,
                               seq_len=seq_len, seq_pad=s_pad)

    def const_spec(shape):
        n = len(shape)
        return pl.BlockSpec(shape, lambda bb, ll, _n=n: (0,) * _n)

    def layer_spec(shape):
        n = len(shape)
        return pl.BlockSpec((1,) + tuple(shape[1:]),
                            lambda bb, ll, _n=n: (ll,) + (0,) * (_n - 1))

    in_specs = [pl.BlockSpec((1, s_pad, w), lambda bb, ll: (bb, 0, 0)),  # x (per batch)
                const_spec(pos.shape),
                const_spec(lnpre[0].shape),
                const_spec(lnpre[1].shape)]
    in_specs += [layer_spec(p.shape) for p in stacked]

    # NOTE(v7x): for ViT-L-scale widths, raise vmem_limit_bytes here and/or
    # chunk the MLP over the 4W dimension; unnecessary at these sizes.
    return pl.pallas_call(
        kernel,
        out_shape=jax.ShapeDtypeStruct((b, s_pad, w), jnp.float32),
        grid=(b, layers),
        in_specs=in_specs,
        out_specs=pl.BlockSpec((1, s_pad, w), lambda bb, ll: (bb, 0, 0)),
        compiler_params=pltpu.CompilerParams(
            dimension_semantics=("parallel", "arbitrary")),
    )(seq, pos, lnpre[0], lnpre[1], *stacked)


# ----------------------------------------------------------------------------
# kernel 3: ln_post on the CLS token + final projection (lane-dense output)
# ----------------------------------------------------------------------------
def _head_kernel(x_ref, g_ref, b_ref, p_ref, o_ref):
    h = _layernorm(x_ref[...], g_ref[...], b_ref[...])
    o_ref[...] = jnp.dot(h.astype(jnp.bfloat16), p_ref[...],
                         preferred_element_type=jnp.float32)


def head(x_cls, gamma, beta, proj_padded, output_dim):
    b, w = x_cls.shape
    od_pad = proj_padded.shape[1]          # already padded to a multiple of 128
    out = pl.pallas_call(
        _head_kernel,
        out_shape=jax.ShapeDtypeStruct((b, od_pad), jnp.float32),
        grid=(1,),
        in_specs=[pl.BlockSpec((b, w), lambda i: (0, 0)),
                  pl.BlockSpec((1, w), lambda i: (0, 0)),
                  pl.BlockSpec((1, w), lambda i: (0, 0)),
                  pl.BlockSpec((w, od_pad), lambda i: (0, 0))],
        out_specs=pl.BlockSpec((b, od_pad), lambda i: (0, 0)),
    )(x_cls, gamma, beta, proj_padded)
    return out[:, :output_dim]


# ----------------------------------------------------------------------------
# parameter init (deterministic, shapes per the module's __init__)
# ----------------------------------------------------------------------------
def init_params(key, *, width, patch_size, image_resolution, output_dim, layers):
    n_patches = (image_resolution // patch_size) ** 2
    scale = width ** -0.5
    keys = jax.random.split(key, 8 + layers)

    conv_w = 0.02 * jax.random.normal(
        keys[0], (width, 3, patch_size, patch_size), jnp.float32)
    proj = scale * jax.random.normal(keys[3], (width, output_dim), jnp.float32)
    od_pad = _round_up(output_dim, 128)

    params = {
        # Conv2d(3, width, kernel=P, stride=P, bias=False) flattened to a
        # [C*P*P, width] matmul weight, pre-cast to bf16 (MXU operand).
        "conv_w_flat": conv_w.reshape(width, -1).T.astype(jnp.bfloat16),
        "class_emb": scale * jax.random.normal(keys[1], (width,), jnp.float32),
        "pos_emb": scale * jax.random.normal(keys[2], (n_patches + 1, width), jnp.float32),
        "ln_pre": (jnp.ones((1, width), jnp.float32), jnp.zeros((1, width), jnp.float32)),
        "ln_post": (jnp.ones((1, width), jnp.float32), jnp.zeros((1, width), jnp.float32)),
        # final projection pre-padded to 128 lanes for an unmasked (lane-dense) store
        "proj": jnp.pad(proj, ((0, 0), (0, od_pad - output_dim))).astype(jnp.bfloat16),
        "output_dim": output_dim,
    }

    blocks = []
    for layer in range(layers):
        bk = jax.random.split(keys[8 + layer], 8)
        # weights stored already transposed to [in, out] so kernels do plain x @ W
        blocks.append((
            jnp.ones((1, width), jnp.float32), jnp.zeros((1, width), jnp.float32),   # ln_1
            0.02 * jax.random.normal(bk[0], (width, 3 * width), jnp.float32),        # W_qkv
            0.02 * jax.random.normal(bk[1], (1, 3 * width), jnp.float32),            # b_qkv
            0.02 * jax.random.normal(bk[2], (width, width), jnp.float32),            # W_out
            0.02 * jax.random.normal(bk[3], (1, width), jnp.float32),                # b_out
            jnp.ones((1, width), jnp.float32), jnp.zeros((1, width), jnp.float32),   # ln_2
            0.02 * jax.random.normal(bk[4], (width, 4 * width), jnp.float32),        # W_fc
            0.02 * jax.random.normal(bk[5], (1, 4 * width), jnp.float32),            # b_fc
            0.02 * jax.random.normal(bk[6], (4 * width, width), jnp.float32),        # W_proj
            0.02 * jax.random.normal(bk[7], (1, width), jnp.float32),                # b_proj
        ))

    # stack every block parameter along a leading layer axis; the four big
    # weight matrices (indices 2,4,8,10) are stored in bf16 (MXU operands).
    weight_idx = {2, 4, 8, 10}
    stacked = []
    for i in range(len(blocks[0])):
        arr = jnp.stack([blk[i] for blk in blocks], axis=0)
        if i in weight_idx:
            arr = arr.astype(jnp.bfloat16)
        stacked.append(arr)
    params["blocks"] = tuple(stacked)
    params["width"] = width
    return params


# ----------------------------------------------------------------------------
# full forward pass
# ----------------------------------------------------------------------------
def vision_transformer_forward(x, params, *, patch_size, heads):
    b, c, h_img, w_img = x.shape
    p = patch_size
    nh, nw = h_img // p, w_img // p
    n = nh * nw
    width = params["width"]

    # conv1 (stride == kernel) as patch matmul; spatial order (h_patch, w_patch)
    # matches x.reshape(B, C, -1).permute(0, 2, 1) in the PyTorch forward.
    patches = (x.reshape(b, c, nh, p, nw, p)
                 .transpose(0, 2, 4, 1, 3, 5)
                 .reshape(b * n, c * p * p)).astype(jnp.bfloat16)
    emb = patch_embed(patches, params["conv_w_flat"]).reshape(b, n, width)

    # class-token concat + pad sequence to a multiple of 128 (layout glue);
    # the padded key columns are masked inside the transformer kernel.
    seq_len = n + 1
    seq_pad = _round_up(seq_len, 128)
    seq = jnp.zeros((b, seq_pad, width), jnp.float32)
    seq = seq.at[:, 0, :].set(params["class_emb"][None, :])
    seq = seq.at[:, 1:seq_len, :].set(emb)
    pos = jnp.zeros((seq_pad, width), jnp.float32).at[:seq_len].set(params["pos_emb"])

    # fused (+pos, ln_pre) + all transformer blocks in one pallas_call
    seq = transformer_blocks(seq, pos, params["ln_pre"], params["blocks"],
                             heads=heads, seq_len=seq_len)

    # ln_post on CLS token + projection (lane-dense padded output, sliced back)
    return head(seq[:, 0, :], *params["ln_post"], params["proj"],
                params["output_dim"])


# ----------------------------------------------------------------------------
if __name__ == "__main__":
    # small ViT config: 16x16 image, 8x8 patches -> 4 patches + CLS = 5 tokens
    B = 2
    IMAGE_RES = 16
    PATCH = 8
    WIDTH = 32
    LAYERS = 2
    HEADS = 4
    OUTPUT_DIM = 16

    root = jax.random.PRNGKey(0)
    k_x, k_p = jax.random.split(root)

    x = jax.random.normal(k_x, (B, 3, IMAGE_RES, IMAGE_RES), jnp.float32)
    params = init_params(k_p, width=WIDTH, patch_size=PATCH,
                         image_resolution=IMAGE_RES, output_dim=OUTPUT_DIM,
                         layers=LAYERS)

    out = vision_transformer_forward(x, params, patch_size=PATCH, heads=HEADS)
    out = jax.block_until_ready(out)
    assert out.shape == (B, OUTPUT_DIM), out.shape
    assert bool(jnp.all(jnp.isfinite(out))), "non-finite output"
    print("KERNEL_OK")
</pallas_src>

<mosaic_0001>
module attributes {stable_mosaic.version = 11 : i64} {
  func.func @_patch_embed_kernel(%arg0: i32, %arg1: memref<8x192xbf16, #tpu.memory_space<vmem>>, %arg2: memref<192x32xbf16, #tpu.memory_space<vmem>>, %arg3: memref<8x32xf32, #tpu.memory_space<vmem>>) attributes {dimension_semantics = [#tpu.dimension_semantics<parallel>], iteration_bounds = array<i64: 1>, scalar_prefetch = 0 : i64, scratch_operands = 0 : i64, tpu.core_type = #tpu.core_type<tc>, window_params = [{transform_indices = @transform_0, window_bounds = array<i64: 8, 192>}, {pipeline_mode = #tpu.pipeline_mode<synchronous>, transform_indices = @transform_1, window_bounds = array<i64: 192, 32>}, {transform_indices = @transform_2, window_bounds = array<i64: 8, 32>}]} {
    %c0 = arith.constant 0 : index
    %c0_0 = arith.constant 0 : index
    %0 = vector.load %arg1[%c0, %c0_0] : memref<8x192xbf16, #tpu.memory_space<vmem>>, vector<8x192xbf16>
    %c0_1 = arith.constant 0 : index
    %c0_2 = arith.constant 0 : index
    %1 = vector.load %arg2[%c0_1, %c0_2] : memref<192x32xbf16, #tpu.memory_space<vmem>>, vector<192x32xbf16>
    %cst = arith.constant dense<0.000000e+00> : vector<8x32xf32>
    %2 = tpu.matmul %0, %1, %cst {dimension_numbers = #tpu.dot_dimension_numbers<[1], [0], [0], [1], [0, 0, 1, 1], [], []>} : vector<8x192xbf16>, vector<192x32xbf16>, vector<8x32xf32> -> vector<8x32xf32>
    %c0_3 = arith.constant 0 : index
    %c0_4 = arith.constant 0 : index
    %3 = vector.load %arg3[%c0_3, %c0_4] : memref<8x32xf32, #tpu.memory_space<vmem>>, vector<8x32xf32>
    tpu.vector_store %arg3[%c0_3, %c0_4], %2 {strides = array<i32>} : memref<8x32xf32, #tpu.memory_space<vmem>>, vector<8x32xf32>,
    return
  }
  func.func @transform_0(%arg0: i32) -> (i32, i32) {
    %c0_i32 = arith.constant 0 : i32
    %c0_i32_0 = arith.constant 0 : i32
    return %arg0, %c0_i32 : i32, i32
  }
  func.func @transform_1(%arg0: i32) -> (i32, i32) {
    %c0_i32 = arith.constant 0 : i32
    %c0_i32_0 = arith.constant 0 : i32
    %c0_i32_1 = arith.constant 0 : i32
    return %c0_i32, %c0_i32_0 : i32, i32
  }
  func.func @transform_2(%arg0: i32) -> (i32, i32) {
    %c0_i32 = arith.constant 0 : i32
    %c0_i32_0 = arith.constant 0 : i32
    return %arg0, %c0_i32 : i32, i32
  }
}

</mosaic_0001>

<bundles_post_ra>
// kernel: tpu_custom_call.1
= control target key start
LH: loop header
LB: loop body
LE: loop exit
PB: predicated region body
PF: predicated region fallthrough
CT: control target
= control target key end

     0   :  { %v231_v1 = vmov 0   ;;  %vm116_vm0 = vcmask 523264   ;;  %s299_s0 = inlined_call_operand.vmem [shape: bf16[8,192], index: 0, kind: input, shape index: {}]   ;;  %s300_s1 = inlined_call_operand.vmem [shape: bf16[192,32], index: 1, kind: input, shape index: {}]   ;;  %s301_s2 = inlined_call_operand.hbm [shape: f32[8,32], index: 2, kind: output, shape index: {}]  }
   0x1   :  { %v193_v0 = vld [vmem:[%s300_s1] sm:$0xff]   ;;  %120 = vmatprep.subr.bf16.mxu0 %v231_v1  ;;  %v194_v2 = vld [vmem:[%s300_s1 + $0x8] sm:$0xff]   ;;  %v195_v3 = vld [vmem:[%s300_s1 + $0x10] sm:$0xff]  }
   0x2   :  { %121 = vmatpush1.bf16.msra.mxu0 %v193_v0  ;;  %v196_v4 = vld [vmem:[%s300_s1 + $0x18] sm:$0xff]   ;;  %v13_v5 = vld [vmem:[%s299_s0] sm:$0xff] }
   0x3   :  { %122 = vmatprep.subr.bf16.mxu0 %v231_v1 }
   0x6   :  { %123 = vmatpush1.bf16.msra.mxu0 %v194_v2 }
   0x7   :  { %124 = vmatprep.subr.bf16.mxu0 %v231_v1 }
   0xa   :  { %125 = vmatpush1.bf16.msra.mxu0 %v195_v3 }
   0xb   :  { %126 = vmatprep.subr.bf16.mxu0 %v231_v1 }
   0xc   :  { %7 = vsyncpa [#allocation3], 0  ;;  %v177_v6 = vcombine.high %v13_v5, %v13_v5  ;;  %v197_v7 = vld [vmem:[%s300_s1 + $0x20] sm:$0xff]   ;;  %v198_v8 = vld [vmem:[%s300_s1 + $0x28] sm:$0xff]   ;;  %v176_v15 = vcombine.low %v13_v5, %v13_v5  ;;  %s232_s6 = smov [#allocation2]   ;;  %vm160_vm1 = vcmask 261120  }
   0xd   :  { %v199_v9 = vld [vmem:[%s300_s1 + $0x30] sm:$0xff]   ;;  %v200_v10 = vld [vmem:[%s300_s1 + $0x38] sm:$0xff]   ;;  %v201_v11 = vld [vmem:[%s300_s1 + $0x40] sm:$0xff]   ;;  %s168_s7 = sshll.u32 %s232_s6, 4  ;;  %s169_s7 = int_to_ptr.vmem [resolvable:$true] %s168_s7 }
   0xe   :  { %127 = vmatpush1.bf16.msra.mxu0 %v196_v4  ;;  %190 = vmatprep.mubr.msk.bf16.mxu0 %vm116_vm0, %v177_v6  ;;  %v202_v12 = vld [vmem:[%s300_s1 + $0x48] sm:$0xff]   ;;  %v203_v13 = vld [vmem:[%s300_s1 + $0x50] sm:$0xff]   ;;  %v204_v14 = vld [vmem:[%s300_s1 + $0x58] sm:$0xff]   ;;  %s207_s8 = scalar_lea.vmem %s169_s7, 128  ;;  %p212_p1 = scmp.lt.s32.totalorder %s169_s7, %s169_s7 }
   0xf   :  { %128 = vmatprep.subr.bf16.mxu0 %v231_v1  ;;  %p208_p0 = scmp.ne.s32.totalorder %s169_s7, %s207_s8  ;;  %p213_p2 = scmp.lt.s32.totalorder %s207_s8, %s207_s8 }
  0x11   :  { %p214_p3 = por %p213_p2, %p212_p1 }
  0x12   :  { %129 = vmatpush1.bf16.msra.mxu0 %v197_v7 }
  0x13   :  { %130 = vmatprep.subr.bf16.mxu0 %v231_v1  ;;  %p215_p4 = pnand %p214_p3, %p208_p0 }
  0x16   :  { %131 = vmatpush1.bf16.msra.mxu0 %v198_v8 }
  0x17   :  { %132 = vmatprep.subr.bf16.mxu0 %v231_v1 }
  0x1a   :  { %133 = vmatpush1.bf16.msra.mxu0 %v199_v9 }
  0x1b   :  { %134 = vmatprep.subr.bf16.mxu0 %v231_v1 }
  0x1e   :  { %135 = vmatpush1.bf16.msra.mxu0 %v200_v10 }
  0x1f   :  { %136 = vmatprep.subr.bf16.mxu0 %v231_v1 }
  0x22   :  { %137 = vmatpush1.bf16.msra.mxu0 %v201_v11 }
  0x23   :  { %138 = vmatprep.subr.bf16.mxu0 %v231_v1 }
  0x26   :  { %139 = vmatpush1.bf16.msra.mxu0 %v202_v12 }
  0x27   :  { %140 = vmatprep.subr.bf16.mxu0 %v231_v1 }
  0x2a   :  { %141 = vmatpush1.bf16.msra.mxu0 %v203_v13 }
  0x2b   :  { %142 = vmatprep.subr.bf16.mxu0 %v231_v1 }
  0x2e   :  { %143 = vmatpush1.bf16.msra.mxu0 %v204_v14 }
  0x31   :  { %153 = vmatmul.mubr.bf16.vlgmr.msra.gmra.mrb[0].mxu0 %v176_v15 }
 0x104   :  { %v154_v16 = vpop.f32.mrb[0].mxu0 }
 0x105   :  { %161 = vst.msk [vmem:[#allocation2] sm:$0xff] %vm160_vm1, %v154_v16  ;;  %v156_v17 = vpop.f32.mrb[1].mxu0 }
 0x106   :  { %v157_v18 = vpop.f32.mrb[2].mxu0 }
 0x107   :  { %218 = shalt.err (!%p215_p4)
}
 0x108   :  { %s219_s10 = scalar_lea.hbm %s301_s2, 128 }
 0x109   :  { %p220_p5 = scmp.ne.s32.totalorder %s301_s2, %s219_s10  ;;  %p223_p6 = scmp.lt.u32.totalorder %s219_s10, %s301_s2 }
 0x10b   :  { %p225_p7 = pnand %p223_p6, %p220_p5 }
 0x10d   :  { %228 = shalt.err (!%p225_p7)
}
 0x10e   :  { %171 = dma.vmem_to_hbm [thread:$0]  %s169_s7, 128, %s301_s2, [#allocation3]   ;;  %v158_v19 = vpop.f32.mrb[3].mxu0 }
 0x10f   :  { %229 = dma.done.wait [#allocation3], 128  }
 0x110   :  { %230 = vsyncadd [#allocation3], 4294967168 }
 0x111   :  { %175 = vsyncpa [#allocation3], 1 }

</bundles_post_ra>
